<compile_context>
chip_gen: v7x
topology: tpu7x:2x2x1
jax: 0.10.0
libtpu: 0.0.40
codegen_flags: <defaults>
</compile_context>

<pallas_src>
import functools

import jax
import jax.numpy as jnp
from jax import lax
from jax.experimental import pallas as pl
from jax.experimental.pallas import tpu as pltpu

VOCAB = 32000              # from Emb.__init__
DIM = 4096                 # from Emb.__init__
TOKENS_PER_BLOCK = 512     # tokens gathered per grid step (no VMEM per-step cost)
MAX_SMEM_TOKENS = 131072   # cap on flattened T: (T,) int32 ids live in SMEM


def _default_max_inflight():
    """Concurrent row DMAs (semaphore slots).

    v5e (~0.82 TB/s HBM) is bandwidth-bound with ~32 x 16 KiB outstanding;
    v6e/v7x need more bytes in flight to cover per-DMA latency.
    """
    try:
        kind = jax.devices()[0].device_kind.lower()
    except Exception:
        return 64
    if ("v5 lite" in kind) or ("v5e" in kind) or ("v5lite" in kind):
        return 32
    return 64


def _emb_kernel(ids_ref, table_ref, out_ref, sems, *,
                tokens_per_block, num_sems, needs_guard):
    """Gather `tokens_per_block` table rows HBM->HBM into the output.

    ids_ref   : (T,) int32 token ids in SMEM (scalar prefetch)
    table_ref : (VOCAB, DIM) table in HBM (pl.ANY)  -- DMA gather source
    out_ref   : (T, DIM) output in HBM (pl.ANY)     -- DMA gather destination
    sems      : (num_sems,) DMA semaphores, one per in-flight slot
    """
    total = ids_ref.shape[0]                       # static token count
    num_chunks = tokens_per_block // num_sems      # exact by construction
    base = pl.program_id(0) * tokens_per_block

    def token_copy(slot, dst_idx, row_idx):
        return pltpu.make_async_copy(
            table_ref.at[pl.ds(row_idx, 1), :],    # 1 x DIM table row (HBM)
            out_ref.at[pl.ds(dst_idx, 1), :],      # 1 x DIM output row (HBM)
            sems.at[slot],
        )

    def wait_slot(slot):
        # Wait descriptor only needs a matching transfer size + the slot's
        # semaphore; every copy in this kernel moves exactly one DIM-wide row.
        pltpu.make_async_copy(
            table_ref.at[pl.ds(0, 1), :],
            out_ref.at[pl.ds(0, 1), :],
            sems.at[slot],
        ).wait()

    def do_chunk(chunk, first):
        """Read chunk ids, free this chunk's slots (wait), start chunk DMAs."""
        cbase = base + chunk * num_sems

        # Phase A: ALL SMEM scalar reads before any .wait()
        # (.wait() breaks SMEM store->load forwarding).
        idxs, rows = [], []
        for s in range(num_sems):
            idx = cbase + s
            read_idx = jnp.minimum(idx, total - 1) if needs_guard else idx
            idxs.append(idx)
            rows.append(ids_ref[read_idx])

        # Phase B: wait on the previous chunk's copies occupying these slots.
        if not first:
            for s in range(num_sems):
                if needs_guard:
                    prev_idx = idxs[s] - num_sems

                    @pl.when(prev_idx < total)
                    def _(s=s):
                        wait_slot(s)
                else:
                    wait_slot(s)

        # Phase C: start this chunk's copies.
        for s in range(num_sems):
            if needs_guard:
                @pl.when(idxs[s] < total)
                def _(s=s, idx=idxs[s], row=rows[s]):
                    token_copy(s, idx, row).start()
            else:
                token_copy(s, idxs[s], rows[s]).start()

    # Chunk 0: no prior copies to wait on.
    do_chunk(0, first=True)

    # Chunks 1..num_chunks-1 as a rolled loop: bounds live scalar ranges and
    # code size to ~num_sems while overlapping waits with in-flight DMAs.
    if num_chunks > 1:
        def body(c, carry):
            do_chunk(c, first=False)
            return carry

        lax.fori_loop(1, num_chunks, body, 0)

    # Drain the final chunk's in-flight copies (matched guards per slot).
    last_base = base + (num_chunks - 1) * num_sems
    for s in range(num_sems):
        if needs_guard:
            @pl.when(last_base + s < total)
            def _(s=s):
                wait_slot(s)
        else:
            wait_slot(s)


def embedding_lookup(ids, table, *, tokens_per_block=None, max_inflight=None):
    """Equivalent of torch.nn.Embedding(table.shape[0], table.shape[1])(ids)."""
    orig_shape = ids.shape
    flat = ids.reshape(-1).astype(jnp.int32)
    T = int(flat.shape[0])
    assert T >= 1, "need at least one token"
    # The prefetched id vector lands in SMEM and pads to next_pow2(4*T) bytes.
    assert T <= MAX_SMEM_TOKENS, (
        f"flattened token count {T} exceeds SMEM budget ({MAX_SMEM_TOKENS}); "
        "shard the batch across multiple embedding_lookup calls")
    D = table.shape[1]

    if tokens_per_block is None:
        tokens_per_block = TOKENS_PER_BLOCK
    if max_inflight is None:
        max_inflight = _default_max_inflight()

    # Ensure >=2 grid blocks when T >= 2 so dimension_semantics=("parallel",)
    # can split the token range across both TensorCores on v7x (harmless on
    # single-TC v5e/v6e: one extra ~0.35us grid step).
    tpb = max(1, min(tokens_per_block, pl.cdiv(T, 2)))
    nsem = max(1, min(max_inflight, tpb))
    # Block size must be an exact multiple of the in-flight chunk size.
    tpb = ((tpb + nsem - 1) // nsem) * nsem
    grid = pl.cdiv(T, tpb)
    needs_guard = (T % tpb) != 0

    kernel = functools.partial(
        _emb_kernel,
        tokens_per_block=tpb,
        num_sems=nsem,
        needs_guard=needs_guard,
    )

    out = pl.pallas_call(
        kernel,
        out_shape=jax.ShapeDtypeStruct((T, D), table.dtype),
        grid_spec=pltpu.PrefetchScalarGridSpec(
            num_scalar_prefetch=1,                          # token ids -> SMEM
            grid=(grid,),
            in_specs=[pl.BlockSpec(memory_space=pl.ANY)],   # table stays in HBM
            out_specs=pl.BlockSpec(memory_space=pl.ANY),    # output stays in HBM
            scratch_shapes=[pltpu.SemaphoreType.DMA((nsem,))],
        ),
        compiler_params=pltpu.CompilerParams(
            dimension_semantics=("parallel",)),             # 2 TCs on v7x
    )(flat, table)

    return out.reshape(orig_shape + (D,))


if __name__ == "__main__":
    key = jax.random.PRNGKey(0)
    k_table, k_ids, k_ids2 = jax.random.split(key, 3)

    # Deterministic parameter init (module shape: 32000 x 4096), N(0,1) like
    # torch.nn.Embedding's default init.
    table = jax.random.normal(k_table, (VOCAB, DIM), dtype=jnp.float32)

    # Small input consistent with the forward: integer token ids, (batch=2, seq=8).
    x = jax.random.randint(k_ids, (2, 8), 0, VOCAB, dtype=jnp.int32)

    y = embedding_lookup(x, table)
    y = jax.block_until_ready(y)

    ref = jnp.take(table, x, axis=0)
    assert y.shape == (2, 8, DIM), y.shape
    assert y.dtype == jnp.float32
    assert bool(jnp.allclose(y, ref)), "mismatch vs reference gather"

    # Second check: ragged tail + multi-chunk fori_loop path (guarded DMAs).
    x2 = jax.random.randint(k_ids2, (3, 5), 0, VOCAB, dtype=jnp.int32)
    y2 = embedding_lookup(x2, table, tokens_per_block=8, max_inflight=2)
    y2 = jax.block_until_ready(y2)
    ref2 = jnp.take(table, x2, axis=0)
    assert y2.shape == (3, 5, DIM), y2.shape
    assert bool(jnp.allclose(y2, ref2)), "mismatch vs reference gather (ragged)"

    print("KERNEL_OK")
</pallas_src>

<mosaic_0001>
module attributes {stable_mosaic.version = 11 : i64} {
  func.func @_emb_kernel(%arg0: i32, %arg1: memref<16xi32, #tpu.memory_space<smem>>, %arg2: memref<32000x4096xf32, #tpu.memory_space<any>>, %arg3: memref<16x4096xf32, #tpu.memory_space<any>>, %arg4: memref<8x!tpu.dma_semaphore, #tpu.memory_space<semaphore_mem>>) attributes {dimension_semantics = [#tpu.dimension_semantics<parallel>], iteration_bounds = array<i64: 2>, scalar_prefetch = 1 : i64, scratch_operands = 1 : i64, tpu.core_type = #tpu.core_type<tc>, window_params = [{}, {}]} {
    %c8_i32 = arith.constant 8 : i32
    %0 = arith.muli %arg0, %c8_i32 : i32
    %c0_i32 = arith.constant 0 : i32
    %1 = arith.addi %0, %c0_i32 : i32
    %c0_i32_0 = arith.constant 0 : i32
    %2 = arith.addi %1, %c0_i32_0 : i32
    %3 = arith.index_cast %2 : i32 to index
    %4 = memref.load %arg1[%3] : memref<16xi32, #tpu.memory_space<smem>>
    %c1_i32 = arith.constant 1 : i32
    %5 = arith.addi %1, %c1_i32 : i32
    %6 = arith.index_cast %5 : i32 to index
    %7 = memref.load %arg1[%6] : memref<16xi32, #tpu.memory_space<smem>>
    %c2_i32 = arith.constant 2 : i32
    %8 = arith.addi %1, %c2_i32 : i32
    %9 = arith.index_cast %8 : i32 to index
    %10 = memref.load %arg1[%9] : memref<16xi32, #tpu.memory_space<smem>>
    %c3_i32 = arith.constant 3 : i32
    %11 = arith.addi %1, %c3_i32 : i32
    %12 = arith.index_cast %11 : i32 to index
    %13 = memref.load %arg1[%12] : memref<16xi32, #tpu.memory_space<smem>>
    %c4_i32 = arith.constant 4 : i32
    %14 = arith.addi %1, %c4_i32 : i32
    %15 = arith.index_cast %14 : i32 to index
    %16 = memref.load %arg1[%15] : memref<16xi32, #tpu.memory_space<smem>>
    %c5_i32 = arith.constant 5 : i32
    %17 = arith.addi %1, %c5_i32 : i32
    %18 = arith.index_cast %17 : i32 to index
    %19 = memref.load %arg1[%18] : memref<16xi32, #tpu.memory_space<smem>>
    %c6_i32 = arith.constant 6 : i32
    %20 = arith.addi %1, %c6_i32 : i32
    %21 = arith.index_cast %20 : i32 to index
    %22 = memref.load %arg1[%21] : memref<16xi32, #tpu.memory_space<smem>>
    %c7_i32 = arith.constant 7 : i32
    %23 = arith.addi %1, %c7_i32 : i32
    %24 = arith.index_cast %23 : i32 to index
    %25 = memref.load %arg1[%24] : memref<16xi32, #tpu.memory_space<smem>>
    %c0_i32_1 = arith.constant 0 : i32
    %c0_i32_2 = arith.constant 0 : i32
    %26 = tpu.memref_slice %arg2[%4, %c0_i32_2] : memref<32000x4096xf32, #tpu.memory_space<any>> -> memref<1x4096xf32, #tpu.memory_space<any>>
    %c0_i32_3 = arith.constant 0 : i32
    %27 = tpu.memref_slice %arg3[%2, %c0_i32_3] : memref<16x4096xf32, #tpu.memory_space<any>> -> memref<1x4096xf32, #tpu.memory_space<any>>
    %28 = tpu.memref_slice %arg4[%c0_i32_1] : memref<8x!tpu.dma_semaphore, #tpu.memory_space<semaphore_mem>> -> memref<1x!tpu.dma_semaphore, #tpu.memory_space<semaphore_mem>>
    %29 = tpu.memref_squeeze %28 : memref<1x!tpu.dma_semaphore, #tpu.memory_space<semaphore_mem>> -> memref<!tpu.dma_semaphore, #tpu.memory_space<semaphore_mem>>
    tpu.enqueue_dma source(%26 : memref<1x4096xf32, #tpu.memory_space<any>>) target(%27 : memref<1x4096xf32, #tpu.memory_space<any>>) target_semaphore(%29 : memref<!tpu.dma_semaphore, #tpu.memory_space<semaphore_mem>>)
    %c1_i32_4 = arith.constant 1 : i32
    %c0_i32_5 = arith.constant 0 : i32
    %30 = tpu.memref_slice %arg2[%7, %c0_i32_5] : memref<32000x4096xf32, #tpu.memory_space<any>> -> memref<1x4096xf32, #tpu.memory_space<any>>
    %c0_i32_6 = arith.constant 0 : i32
    %31 = tpu.memref_slice %arg3[%5, %c0_i32_6] : memref<16x4096xf32, #tpu.memory_space<any>> -> memref<1x4096xf32, #tpu.memory_space<any>>
    %32 = tpu.memref_slice %arg4[%c1_i32_4] : memref<8x!tpu.dma_semaphore, #tpu.memory_space<semaphore_mem>> -> memref<1x!tpu.dma_semaphore, #tpu.memory_space<semaphore_mem>>
    %33 = tpu.memref_squeeze %32 : memref<1x!tpu.dma_semaphore, #tpu.memory_space<semaphore_mem>> -> memref<!tpu.dma_semaphore, #tpu.memory_space<semaphore_mem>>
    tpu.enqueue_dma source(%30 : memref<1x4096xf32, #tpu.memory_space<any>>) target(%31 : memref<1x4096xf32, #tpu.memory_space<any>>) target_semaphore(%33 : memref<!tpu.dma_semaphore, #tpu.memory_space<semaphore_mem>>)
    %c2_i32_7 = arith.constant 2 : i32
    %c0_i32_8 = arith.constant 0 : i32
    %34 = tpu.memref_slice %arg2[%10, %c0_i32_8] : memref<32000x4096xf32, #tpu.memory_space<any>> -> memref<1x4096xf32, #tpu.memory_space<any>>
    %c0_i32_9 = arith.constant 0 : i32
    %35 = tpu.memref_slice %arg3[%8, %c0_i32_9] : memref<16x4096xf32, #tpu.memory_space<any>> -> memref<1x4096xf32, #tpu.memory_space<any>>
    %36 = tpu.memref_slice %arg4[%c2_i32_7] : memref<8x!tpu.dma_semaphore, #tpu.memory_space<semaphore_mem>> -> memref<1x!tpu.dma_semaphore, #tpu.memory_space<semaphore_mem>>
    %37 = tpu.memref_squeeze %36 : memref<1x!tpu.dma_semaphore, #tpu.memory_space<semaphore_mem>> -> memref<!tpu.dma_semaphore, #tpu.memory_space<semaphore_mem>>
    tpu.enqueue_dma source(%34 : memref<1x4096xf32, #tpu.memory_space<any>>) target(%35 : memref<1x4096xf32, #tpu.memory_space<any>>) target_semaphore(%37 : memref<!tpu.dma_semaphore, #tpu.memory_space<semaphore_mem>>)
    %c3_i32_10 = arith.constant 3 : i32
    %c0_i32_11 = arith.constant 0 : i32
    %38 = tpu.memref_slice %arg2[%13, %c0_i32_11] : memref<32000x4096xf32, #tpu.memory_space<any>> -> memref<1x4096xf32, #tpu.memory_space<any>>
    %c0_i32_12 = arith.constant 0 : i32
    %39 = tpu.memref_slice %arg3[%11, %c0_i32_12] : memref<16x4096xf32, #tpu.memory_space<any>> -> memref<1x4096xf32, #tpu.memory_space<any>>
    %40 = tpu.memref_slice %arg4[%c3_i32_10] : memref<8x!tpu.dma_semaphore, #tpu.memory_space<semaphore_mem>> -> memref<1x!tpu.dma_semaphore, #tpu.memory_space<semaphore_mem>>
    %41 = tpu.memref_squeeze %40 : memref<1x!tpu.dma_semaphore, #tpu.memory_space<semaphore_mem>> -> memref<!tpu.dma_semaphore, #tpu.memory_space<semaphore_mem>>
    tpu.enqueue_dma source(%38 : memref<1x4096xf32, #tpu.memory_space<any>>) target(%39 : memref<1x4096xf32, #tpu.memory_space<any>>) target_semaphore(%41 : memref<!tpu.dma_semaphore, #tpu.memory_space<semaphore_mem>>)
    %c4_i32_13 = arith.constant 4 : i32
    %c0_i32_14 = arith.constant 0 : i32
    %42 = tpu.memref_slice %arg2[%16, %c0_i32_14] : memref<32000x4096xf32, #tpu.memory_space<any>> -> memref<1x4096xf32, #tpu.memory_space<any>>
    %c0_i32_15 = arith.constant 0 : i32
    %43 = tpu.memref_slice %arg3[%14, %c0_i32_15] : memref<16x4096xf32, #tpu.memory_space<any>> -> memref<1x4096xf32, #tpu.memory_space<any>>
    %44 = tpu.memref_slice %arg4[%c4_i32_13] : memref<8x!tpu.dma_semaphore, #tpu.memory_space<semaphore_mem>> -> memref<1x!tpu.dma_semaphore, #tpu.memory_space<semaphore_mem>>
    %45 = tpu.memref_squeeze %44 : memref<1x!tpu.dma_semaphore, #tpu.memory_space<semaphore_mem>> -> memref<!tpu.dma_semaphore, #tpu.memory_space<semaphore_mem>>
    tpu.enqueue_dma source(%42 : memref<1x4096xf32, #tpu.memory_space<any>>) target(%43 : memref<1x4096xf32, #tpu.memory_space<any>>) target_semaphore(%45 : memref<!tpu.dma_semaphore, #tpu.memory_space<semaphore_mem>>)
    %c5_i32_16 = arith.constant 5 : i32
    %c0_i32_17 = arith.constant 0 : i32
    %46 = tpu.memref_slice %arg2[%19, %c0_i32_17] : memref<32000x4096xf32, #tpu.memory_space<any>> -> memref<1x4096xf32, #tpu.memory_space<any>>
    %c0_i32_18 = arith.constant 0 : i32
    %47 = tpu.memref_slice %arg3[%17, %c0_i32_18] : memref<16x4096xf32, #tpu.memory_space<any>> -> memref<1x4096xf32, #tpu.memory_space<any>>
    %48 = tpu.memref_slice %arg4[%c5_i32_16] : memref<8x!tpu.dma_semaphore, #tpu.memory_space<semaphore_mem>> -> memref<1x!tpu.dma_semaphore, #tpu.memory_space<semaphore_mem>>
    %49 = tpu.memref_squeeze %48 : memref<1x!tpu.dma_semaphore, #tpu.memory_space<semaphore_mem>> -> memref<!tpu.dma_semaphore, #tpu.memory_space<semaphore_mem>>
    tpu.enqueue_dma source(%46 : memref<1x4096xf32, #tpu.memory_space<any>>) target(%47 : memref<1x4096xf32, #tpu.memory_space<any>>) target_semaphore(%49 : memref<!tpu.dma_semaphore, #tpu.memory_space<semaphore_mem>>)
    %c6_i32_19 = arith.constant 6 : i32
    %c0_i32_20 = arith.constant 0 : i32
    %50 = tpu.memref_slice %arg2[%22, %c0_i32_20] : memref<32000x4096xf32, #tpu.memory_space<any>> -> memref<1x4096xf32, #tpu.memory_space<any>>
    %c0_i32_21 = arith.constant 0 : i32
    %51 = tpu.memref_slice %arg3[%20, %c0_i32_21] : memref<16x4096xf32, #tpu.memory_space<any>> -> memref<1x4096xf32, #tpu.memory_space<any>>
    %52 = tpu.memref_slice %arg4[%c6_i32_19] : memref<8x!tpu.dma_semaphore, #tpu.memory_space<semaphore_mem>> -> memref<1x!tpu.dma_semaphore, #tpu.memory_space<semaphore_mem>>
    %53 = tpu.memref_squeeze %52 : memref<1x!tpu.dma_semaphore, #tpu.memory_space<semaphore_mem>> -> memref<!tpu.dma_semaphore, #tpu.memory_space<semaphore_mem>>
    tpu.enqueue_dma source(%50 : memref<1x4096xf32, #tpu.memory_space<any>>) target(%51 : memref<1x4096xf32, #tpu.memory_space<any>>) target_semaphore(%53 : memref<!tpu.dma_semaphore, #tpu.memory_space<semaphore_mem>>)
    %c7_i32_22 = arith.constant 7 : i32
    %c0_i32_23 = arith.constant 0 : i32
    %54 = tpu.memref_slice %arg2[%25, %c0_i32_23] : memref<32000x4096xf32, #tpu.memory_space<any>> -> memref<1x4096xf32, #tpu.memory_space<any>>
    %c0_i32_24 = arith.constant 0 : i32
    %55 = tpu.memref_slice %arg3[%23, %c0_i32_24] : memref<16x4096xf32, #tpu.memory_space<any>> -> memref<1x4096xf32, #tpu.memory_space<any>>
    %56 = tpu.memref_slice %arg4[%c7_i32_22] : memref<8x!tpu.dma_semaphore, #tpu.memory_space<semaphore_mem>> -> memref<1x!tpu.dma_semaphore, #tpu.memory_space<semaphore_mem>>
    %57 = tpu.memref_squeeze %56 : memref<1x!tpu.dma_semaphore, #tpu.memory_space<semaphore_mem>> -> memref<!tpu.dma_semaphore, #tpu.memory_space<semaphore_mem>>
    tpu.enqueue_dma source(%54 : memref<1x4096xf32, #tpu.memory_space<any>>) target(%55 : memref<1x4096xf32, #tpu.memory_space<any>>) target_semaphore(%57 : memref<!tpu.dma_semaphore, #tpu.memory_space<semaphore_mem>>)
    %c0_i32_25 = arith.constant 0 : i32
    %c0_i32_26 = arith.constant 0 : i32
    %c0_i32_27 = arith.constant 0 : i32
    %58 = tpu.memref_slice %arg2[%c0_i32_26, %c0_i32_27] : memref<32000x4096xf32, #tpu.memory_space<any>> -> memref<1x4096xf32, #tpu.memory_space<any>>
    %c0_i32_28 = arith.constant 0 : i32
    %c0_i32_29 = arith.constant 0 : i32
    %59 = tpu.memref_slice %arg3[%c0_i32_28, %c0_i32_29] : memref<16x4096xf32, #tpu.memory_space<any>> -> memref<1x4096xf32, #tpu.memory_space<any>>
    %60 = tpu.memref_slice %arg4[%c0_i32_25] : memref<8x!tpu.dma_semaphore, #tpu.memory_space<semaphore_mem>> -> memref<1x!tpu.dma_semaphore, #tpu.memory_space<semaphore_mem>>
    %61 = tpu.memref_squeeze %60 : memref<1x!tpu.dma_semaphore, #tpu.memory_space<semaphore_mem>> -> memref<!tpu.dma_semaphore, #tpu.memory_space<semaphore_mem>>
    tpu.wait_dma2 semaphore(%61 : memref<!tpu.dma_semaphore, #tpu.memory_space<semaphore_mem>>) src(%58 : memref<1x4096xf32, #tpu.memory_space<any>>) dst(%59 : memref<1x4096xf32, #tpu.memory_space<any>>)
    %c1_i32_30 = arith.constant 1 : i32
    %c0_i32_31 = arith.constant 0 : i32
    %c0_i32_32 = arith.constant 0 : i32
    %62 = tpu.memref_slice %arg2[%c0_i32_31, %c0_i32_32] : memref<32000x4096xf32, #tpu.memory_space<any>> -> memref<1x4096xf32, #tpu.memory_space<any>>
    %c0_i32_33 = arith.constant 0 : i32
    %c0_i32_34 = arith.constant 0 : i32
    %63 = tpu.memref_slice %arg3[%c0_i32_33, %c0_i32_34] : memref<16x4096xf32, #tpu.memory_space<any>> -> memref<1x4096xf32, #tpu.memory_space<any>>
    %64 = tpu.memref_slice %arg4[%c1_i32_30] : memref<8x!tpu.dma_semaphore, #tpu.memory_space<semaphore_mem>> -> memref<1x!tpu.dma_semaphore, #tpu.memory_space<semaphore_mem>>
    %65 = tpu.memref_squeeze %64 : memref<1x!tpu.dma_semaphore, #tpu.memory_space<semaphore_mem>> -> memref<!tpu.dma_semaphore, #tpu.memory_space<semaphore_mem>>
    tpu.wait_dma2 semaphore(%65 : memref<!tpu.dma_semaphore, #tpu.memory_space<semaphore_mem>>) src(%62 : memref<1x4096xf32, #tpu.memory_space<any>>) dst(%63 : memref<1x4096xf32, #tpu.memory_space<any>>)
    %c2_i32_35 = arith.constant 2 : i32
    %c0_i32_36 = arith.constant 0 : i32
    %c0_i32_37 = arith.constant 0 : i32
    %66 = tpu.memref_slice %arg2[%c0_i32_36, %c0_i32_37] : memref<32000x4096xf32, #tpu.memory_space<any>> -> memref<1x4096xf32, #tpu.memory_space<any>>
    %c0_i32_38 = arith.constant 0 : i32
    %c0_i32_39 = arith.constant 0 : i32
    %67 = tpu.memref_slice %arg3[%c0_i32_38, %c0_i32_39] : memref<16x4096xf32, #tpu.memory_space<any>> -> memref<1x4096xf32, #tpu.memory_space<any>>
    %68 = tpu.memref_slice %arg4[%c2_i32_35] : memref<8x!tpu.dma_semaphore, #tpu.memory_space<semaphore_mem>> -> memref<1x!tpu.dma_semaphore, #tpu.memory_space<semaphore_mem>>
    %69 = tpu.memref_squeeze %68 : memref<1x!tpu.dma_semaphore, #tpu.memory_space<semaphore_mem>> -> memref<!tpu.dma_semaphore, #tpu.memory_space<semaphore_mem>>
    tpu.wait_dma2 semaphore(%69 : memref<!tpu.dma_semaphore, #tpu.memory_space<semaphore_mem>>) src(%66 : memref<1x4096xf32, #tpu.memory_space<any>>) dst(%67 : memref<1x4096xf32, #tpu.memory_space<any>>)
    %c3_i32_40 = arith.constant 3 : i32
    %c0_i32_41 = arith.constant 0 : i32
    %c0_i32_42 = arith.constant 0 : i32
    %70 = tpu.memref_slice %arg2[%c0_i32_41, %c0_i32_42] : memref<32000x4096xf32, #tpu.memory_space<any>> -> memref<1x4096xf32, #tpu.memory_space<any>>
    %c0_i32_43 = arith.constant 0 : i32
    %c0_i32_44 = arith.constant 0 : i32
    %71 = tpu.memref_slice %arg3[%c0_i32_43, %c0_i32_44] : memref<16x4096xf32, #tpu.memory_space<any>> -> memref<1x4096xf32, #tpu.memory_space<any>>
    %72 = tpu.memref_slice %arg4[%c3_i32_40] : memref<8x!tpu.dma_semaphore, #tpu.memory_space<semaphore_mem>> -> memref<1x!tpu.dma_semaphore, #tpu.memory_space<semaphore_mem>>
    %73 = tpu.memref_squeeze %72 : memref<1x!tpu.dma_semaphore, #tpu.memory_space<semaphore_mem>> -> memref<!tpu.dma_semaphore, #tpu.memory_space<semaphore_mem>>
    tpu.wait_dma2 semaphore(%73 : memref<!tpu.dma_semaphore, #tpu.memory_space<semaphore_mem>>) src(%70 : memref<1x4096xf32, #tpu.memory_space<any>>) dst(%71 : memref<1x4096xf32, #tpu.memory_space<any>>)
    %c4_i32_45 = arith.constant 4 : i32
    %c0_i32_46 = arith.constant 0 : i32
    %c0_i32_47 = arith.constant 0 : i32
    %74 = tpu.memref_slice %arg2[%c0_i32_46, %c0_i32_47] : memref<32000x4096xf32, #tpu.memory_space<any>> -> memref<1x4096xf32, #tpu.memory_space<any>>
    %c0_i32_48 = arith.constant 0 : i32
    %c0_i32_49 = arith.constant 0 : i32
    %75 = tpu.memref_slice %arg3[%c0_i32_48, %c0_i32_49] : memref<16x4096xf32, #tpu.memory_space<any>> -> memref<1x4096xf32, #tpu.memory_space<any>>
    %76 = tpu.memref_slice %arg4[%c4_i32_45] : memref<8x!tpu.dma_semaphore, #tpu.memory_space<semaphore_mem>> -> memref<1x!tpu.dma_semaphore, #tpu.memory_space<semaphore_mem>>
    %77 = tpu.memref_squeeze %76 : memref<1x!tpu.dma_semaphore, #tpu.memory_space<semaphore_mem>> -> memref<!tpu.dma_semaphore, #tpu.memory_space<semaphore_mem>>
    tpu.wait_dma2 semaphore(%77 : memref<!tpu.dma_semaphore, #tpu.memory_space<semaphore_mem>>) src(%74 : memref<1x4096xf32, #tpu.memory_space<any>>) dst(%75 : memref<1x4096xf32, #tpu.memory_space<any>>)
    %c5_i32_50 = arith.constant 5 : i32
    %c0_i32_51 = arith.constant 0 : i32
    %c0_i32_52 = arith.constant 0 : i32
    %78 = tpu.memref_slice %arg2[%c0_i32_51, %c0_i32_52] : memref<32000x4096xf32, #tpu.memory_space<any>> -> memref<1x4096xf32, #tpu.memory_space<any>>
    %c0_i32_53 = arith.constant 0 : i32
    %c0_i32_54 = arith.constant 0 : i32
    %79 = tpu.memref_slice %arg3[%c0_i32_53, %c0_i32_54] : memref<16x4096xf32, #tpu.memory_space<any>> -> memref<1x4096xf32, #tpu.memory_space<any>>
    %80 = tpu.memref_slice %arg4[%c5_i32_50] : memref<8x!tpu.dma_semaphore, #tpu.memory_space<semaphore_mem>> -> memref<1x!tpu.dma_semaphore, #tpu.memory_space<semaphore_mem>>
    %81 = tpu.memref_squeeze %80 : memref<1x!tpu.dma_semaphore, #tpu.memory_space<semaphore_mem>> -> memref<!tpu.dma_semaphore, #tpu.memory_space<semaphore_mem>>
    tpu.wait_dma2 semaphore(%81 : memref<!tpu.dma_semaphore, #tpu.memory_space<semaphore_mem>>) src(%78 : memref<1x4096xf32, #tpu.memory_space<any>>) dst(%79 : memref<1x4096xf32, #tpu.memory_space<any>>)
    %c6_i32_55 = arith.constant 6 : i32
    %c0_i32_56 = arith.constant 0 : i32
    %c0_i32_57 = arith.constant 0 : i32
    %82 = tpu.memref_slice %arg2[%c0_i32_56, %c0_i32_57] : memref<32000x4096xf32, #tpu.memory_space<any>> -> memref<1x4096xf32, #tpu.memory_space<any>>
    %c0_i32_58 = arith.constant 0 : i32
    %c0_i32_59 = arith.constant 0 : i32
    %83 = tpu.memref_slice %arg3[%c0_i32_58, %c0_i32_59] : memref<16x4096xf32, #tpu.memory_space<any>> -> memref<1x4096xf32, #tpu.memory_space<any>>
    %84 = tpu.memref_slice %arg4[%c6_i32_55] : memref<8x!tpu.dma_semaphore, #tpu.memory_space<semaphore_mem>> -> memref<1x!tpu.dma_semaphore, #tpu.memory_space<semaphore_mem>>
    %85 = tpu.memref_squeeze %84 : memref<1x!tpu.dma_semaphore, #tpu.memory_space<semaphore_mem>> -> memref<!tpu.dma_semaphore, #tpu.memory_space<semaphore_mem>>
    tpu.wait_dma2 semaphore(%85 : memref<!tpu.dma_semaphore, #tpu.memory_space<semaphore_mem>>) src(%82 : memref<1x4096xf32, #tpu.memory_space<any>>) dst(%83 : memref<1x4096xf32, #tpu.memory_space<any>>)
    %c7_i32_60 = arith.constant 7 : i32
    %c0_i32_61 = arith.constant 0 : i32
    %c0_i32_62 = arith.constant 0 : i32
    %86 = tpu.memref_slice %arg2[%c0_i32_61, %c0_i32_62] : memref<32000x4096xf32, #tpu.memory_space<any>> -> memref<1x4096xf32, #tpu.memory_space<any>>
    %c0_i32_63 = arith.constant 0 : i32
    %c0_i32_64 = arith.constant 0 : i32
    %87 = tpu.memref_slice %arg3[%c0_i32_63, %c0_i32_64] : memref<16x4096xf32, #tpu.memory_space<any>> -> memref<1x4096xf32, #tpu.memory_space<any>>
    %88 = tpu.memref_slice %arg4[%c7_i32_60] : memref<8x!tpu.dma_semaphore, #tpu.memory_space<semaphore_mem>> -> memref<1x!tpu.dma_semaphore, #tpu.memory_space<semaphore_mem>>
    %89 = tpu.memref_squeeze %88 : memref<1x!tpu.dma_semaphore, #tpu.memory_space<semaphore_mem>> -> memref<!tpu.dma_semaphore, #tpu.memory_space<semaphore_mem>>
    tpu.wait_dma2 semaphore(%89 : memref<!tpu.dma_semaphore, #tpu.memory_space<semaphore_mem>>) src(%86 : memref<1x4096xf32, #tpu.memory_space<any>>) dst(%87 : memref<1x4096xf32, #tpu.memory_space<any>>)
    return
  }
}

</mosaic_0001>

<bundles_post_ra>
// kernel: tpu_custom_call.1
= control target key start
LH: loop header
LB: loop body
LE: loop exit
PB: predicated region body
PF: predicated region fallthrough
CT: control target
= control target key end

     0   :  { %s734_s0 = inlined_call_operand.hbm [shape: s32[16], index: 0, kind: input, shape index: {}]   ;;  %s735_s1 = inlined_call_operand.hbm [shape: f32[32000,4096], index: 1, kind: input, shape index: {}]   ;;  %s736_s2 = inlined_call_operand.hbm [shape: f32[16,4096], index: 2, kind: output, shape index: {}]  }
   0x1   :  { %s499_s11 = scalar_lea.hbm %s734_s0, 16 }
   0x2   :  { %p500_p0 = scmp.ne.s32.totalorder %s734_s0, %s499_s11  ;;  %p503_p1 = scmp.lt.u32.totalorder %s499_s11, %s734_s0 }
   0x4   :  { %p505_p2 = pnand %p503_p1, %p500_p0 }
   0x6   :  { %508 = shalt.err (!%p505_p2)  }
   0x7   :  { %s535_s16 = smov [#allocation4]  }
   0x8   :  { %8 = dma.hbm_to_smem %s734_s0, 16, %s535_s16, [#allocation3] }
   0x9   :  { %513 = dma.done.wait [#allocation3], 16 }
   0xa   :  { %514 = vsyncadd [#allocation3], 4294967280 }
   0xb   :  { %10 = sfence }
   0xc   :  { %s582_s19 = smov 0  }
   0xd LB: > { %749 = sst [smem:[#allocation30_spill]] %s533_s19  ;;  %s533_s19 = sphi %s582_s19, %s16_s19  }
   0xe   : > { %s430_s20 = sshll.u32 %s533_s19, 3  ;;  %s741_s19 = smov 128  }
   0xf   : > { %s19_s21 = sld [smem:[#allocation4 + %s430_s20]]  ;;  %s588_s22 = sadd.s32 1, %s430_s20 }
  0x10   : > { %s591_s23 = sld [smem:[#allocation4 + %s588_s22]]  ;;  %s593_s24 = sadd.s32 2, %s430_s20 }
  0x11   : > { %s596_s0 = sld [smem:[#allocation4 + %s593_s24]]  ;;  %s598_s25 = sadd.s32 3, %s430_s20 }
  0x12   : > { %s601_s26 = sld [smem:[#allocation4 + %s598_s25]]  ;;  %s603_s27 = sadd.s32 4, %s430_s20 }
  0x13   : > { %s606_s28 = sld [smem:[#allocation4 + %s603_s27]]  ;;  %s608_s29 = sadd.s32 5, %s430_s20 }
  0x14   : > { %s611_s30 = sld [smem:[#allocation4 + %s608_s29]]  ;;  %s613_s3 = sadd.s32 6, %s430_s20 }
  0x15   : > { %750 = sst [smem:[#allocation31_spill]] %s613_s3  ;;  %s618_s5 = sadd.s32 7, %s430_s20 }
  0x16   : > { %s616_s4 = sld [smem:[#allocation4 + %s613_s3]]  ;;  %s34_s7 = sshrl.u32 %s19_s21, 3 }
  0x17   : > { %751 = sst [smem:[#allocation32_spill]] %s618_s5  ;;  %s35_s8 = sand.u32 7, %s19_s21  }
  0x18   : > { %s621_s6 = sld [smem:[#allocation4 + %s618_s5]]  ;;  %s431_s9 = sshll.u32 %s34_s7, 8 }
  0x19   : > { %s37_s10 = sadd.s32 %s431_s9, %s35_s8  ;;  %s40_s11 = sshrl.u32 %s430_s20, 3 }
  0x1a   : > { %s432_s12 = sshll.u32 %s37_s10, 4  ;;  %s41_s13 = sand.u32 7, %s430_s20  }
  0x1b   : > { %s39_s16 = scalar_lea.hbm %s735_s1, %s432_s12  ;;  %s433_s17 = sshll.u32 %s40_s11, 8 }
  0x1c   : > { %s43_s18 = sadd.s32 %s433_s17, %s41_s13  ;;  %58 = sst [smem:[#allocation6]] %s741_s19 }
  0x1d   : > { %s434_s5 = sshll.u32 %s43_s18, 4  ;;  %60 = sst [smem:[#allocation6 + $0x1]] %s741_s19 }
  0x1e   : > { %752 = sst [smem:[#allocation33_spill]] %s621_s6  ;;  %s45_s8 = scalar_lea.hbm %s736_s2, %s434_s5 }
  0x1f   : > { %s743_s20 = smov 1   ;;  %s538_s9 = smov [#allocation2]  }
  0x20   : > { %62 = sst [smem:[#allocation6 + $0x2]] %s743_s20  ;;  %s539_s10 = smov [#allocation5]  }
  0x21   : > { %s745_s11 = smov 0   ;;  %s65_s12 = sshrl.u32 %s591_s23, 3 }
  0x22   : > { %64 = dma.general %s39_s16, 512, %s45_s8, %s538_s9, %s539_s10, [#allocation6], %s745_s11, 0  }
  0x23   : > { %90 = sst [smem:[#allocation8]] %s741_s19  ;;  %s66_s13 = sand.u32 7, %s591_s23  }
  0x24   : > { %92 = sst [smem:[#allocation8 + $0x1]] %s741_s19  ;;  %s435_s5 = sshll.u32 %s65_s12, 8 }
  0x25   : > { %94 = sst [smem:[#allocation8 + $0x2]] %s743_s20  ;;  %s68_s14 = sadd.s32 %s435_s5, %s66_s13 }
  0x26   : > { %s71_s15 = sshrl.u32 %s588_s22, 3  ;;  %s436_s17 = sshll.u32 %s68_s14, 4 }
  0x27   : > { %s72_s18 = sand.u32 7, %s588_s22   ;;  %s70_s6 = scalar_lea.hbm %s735_s1, %s436_s17 }
  0x28   : > { %s437_s16 = sshll.u32 %s71_s15, 8  ;;  %s97_s20 = sshrl.u32 %s596_s0, 3 }
  0x29   : > { %s74_s8 = sadd.s32 %s437_s16, %s72_s18  ;;  %s541_s11 = smov [#allocation2 + $0x1]  }
  0x2a   : > { %s438_s9 = sshll.u32 %s74_s8, 4  ;;  %s542_s12 = smov [#allocation7]  }
  0x2b   : > { %s76_s23 = scalar_lea.hbm %s736_s2, %s438_s9  ;;  %s753_s13 = smov 0  }
  0x2c   : > { %96 = dma.general %s70_s6, 512, %s76_s23, %s541_s11, %s542_s12, [#allocation8], %s753_s13, 0  }
  0x2d   : > { %s754_s22 = smov 128   ;;  %s98_s5 = sand.u32 7, %s596_s0  }
  0x2e   : > { %122 = sst [smem:[#allocation10]] %s754_s22  ;;  %s439_s14 = sshll.u32 %s97_s20, 8 }
  0x2f   : > { %124 = sst [smem:[#allocation10 + $0x1]] %s754_s22  ;;  %s755_s15 = smov 1  }
  0x30   : > { %126 = sst [smem:[#allocation10 + $0x2]] %s755_s15  ;;  %s100_s17 = sadd.s32 %s439_s14, %s98_s5 }
  0x31   : > { %s440_s18 = sshll.u32 %s100_s17, 4  ;;  %s103_s21 = sshrl.u32 %s593_s24, 3 }
  0x32   : > { %s102_s16 = scalar_lea.hbm %s735_s1, %s440_s18  ;;  %s104_s8 = sand.u32 7, %s593_s24  }
  0x33   : > { %s441_s9 = sshll.u32 %s103_s21, 8  ;;  %s129_s10 = sshrl.u32 %s601_s26, 3 }
  0x34   : > { %s106_s6 = sadd.s32 %s441_s9, %s104_s8  ;;  %s130_s12 = sand.u32 7, %s601_s26  }
  0x35   : > { %s442_s11 = sshll.u32 %s106_s6, 4  ;;  %s543_s3 = smov [#allocation2 + $0x2]  }
  0x36   : > { %s108_s20 = scalar_lea.hbm %s736_s2, %s442_s11  ;;  %s544_s5 = smov [#allocation9]  }
  0x37   : > { %128 = dma.general %s102_s16, 512, %s108_s20, %s543_s3, %s544_s5, [#allocation10], %s753_s13, 0  }
  0x38   : > { %154 = sst [smem:[#allocation12]] %s754_s22  ;;  %s443_s14 = sshll.u32 %s129_s10, 8 }
  0x39   : > { %156 = sst [smem:[#allocation12 + $0x1]] %s754_s22  ;;  %s132_s24 = sadd.s32 %s443_s14, %s130_s12 }
  0x3a   : > { %158 = sst [smem:[#allocation12 + $0x2]] %s755_s15  ;;  %s444_s17 = sshll.u32 %s132_s24, 4 }
  0x3b   : > { %s134_s19 = scalar_lea.hbm %s735_s1, %s444_s17  ;;  %s135_s26 = sshrl.u32 %s598_s25, 3 }
  0x3c   : > { %s136_s7 = sand.u32 7, %s598_s25   ;;  %s445_s8 = sshll.u32 %s135_s26, 8 }
  0x3d   : > { %s138_s9 = sadd.s32 %s445_s8, %s136_s7  ;;  %s161_s10 = sshrl.u32 %s606_s28, 3 }
  0x3e   : > { %s446_s3 = sshll.u32 %s138_s9, 4  ;;  %s545_s0 = smov [#allocation2 + $0x3]  }
  0x3f   : > { %s140_s11 = scalar_lea.hbm %s736_s2, %s446_s3  ;;  %s546_s23 = smov [#allocation11]  }
  0x40   : > { %160 = dma.general %s134_s19, 512, %s140_s11, %s545_s0, %s546_s23, [#allocation12], %s753_s13, 0  }
  0x41   : > { %186 = sst [smem:[#allocation14]] %s754_s22  ;;  %s162_s20 = sand.u32 7, %s606_s28  }
  0x42   : > { %188 = sst [smem:[#allocation14 + $0x1]] %s754_s22  ;;  %s447_s25 = sshll.u32 %s161_s10, 8 }
  0x43   : > { %190 = sst [smem:[#allocation14 + $0x2]] %s755_s15  ;;  %s164_s12 = sadd.s32 %s447_s25, %s162_s20 }
  0x44   : > { %s448_s5 = sshll.u32 %s164_s12, 4  ;;  %s167_s14 = sshrl.u32 %s603_s27, 3 }
  0x45   : > { %s166_s18 = scalar_lea.hbm %s735_s1, %s448_s5  ;;  %s168_s21 = sand.u32 7, %s603_s27  }
  0x46   : > { %s449_s26 = sshll.u32 %s167_s14, 8  ;;  %s193_s8 = sshrl.u32 %s611_s30, 3 }
  0x47   : > { %s170_s19 = sadd.s32 %s449_s26, %s168_s21  ;;  %s194_s16 = sand.u32 7, %s611_s30  }
  0x48   : > { %s450_s7 = sshll.u32 %s170_s19, 4  ;;  %s547_s6 = smov [#allocation2 + $0x4]  }
  0x49   : > { %s172_s3 = scalar_lea.hbm %s736_s2, %s450_s7  ;;  %s548_s11 = smov [#allocation13]  }
  0x4a   : > { %192 = dma.general %s166_s18, 512, %s172_s3, %s547_s6, %s548_s11, [#allocation14], %s753_s13, 0  }
  0x4b   : > { %218 = sst [smem:[#allocation16]] %s754_s22  ;;  %s451_s10 = sshll.u32 %s193_s8, 8 }
  0x4c   : > { %220 = sst [smem:[#allocation16 + $0x1]] %s754_s22  ;;  %s196_s27 = sadd.s32 %s451_s10, %s194_s16 }
  0x4d   : > { %222 = sst [smem:[#allocation16 + $0x2]] %s755_s15  ;;  %s452_s0 = sshll.u32 %s196_s27, 4 }
  0x4e   : > { %s198_s25 = scalar_lea.hbm %s735_s1, %s452_s0  ;;  %s199_s30 = sshrl.u32 %s608_s29, 3 }
  0x4f   : > { %s200_s12 = sand.u32 7, %s608_s29   ;;  %s756_s5 = sld [smem:[#allocation31_spill]] }
  0x50   : > { %s453_s14 = sshll.u32 %s199_s30, 8  ;;  %s225_s19 = sshrl.u32 %s616_s4, 3 }
  0x51   : > { %s202_s24 = sadd.s32 %s453_s14, %s200_s12  ;;  %s549_s7 = smov [#allocation2 + $0x5]  }
  0x52   : > { %s454_s17 = sshll.u32 %s202_s24, 4  ;;  %s757_s8 = sld [smem:[#allocation33_spill]] }
  0x53   : > { %s204_s26 = scalar_lea.hbm %s736_s2, %s454_s17  ;;  %s550_s28 = smov [#allocation15]  }
  0x54   : > { %224 = dma.general %s198_s25, 512, %s204_s26, %s549_s7, %s550_s28, [#allocation16], %s753_s13, 0  }
  0x55   : > { %250 = sst [smem:[#allocation18]] %s754_s22  ;;  %s226_s9 = sand.u32 7, %s616_s4  }
  0x56   : > { %252 = sst [smem:[#allocation18 + $0x1]] %s754_s22  ;;  %s455_s29 = sshll.u32 %s225_s19, 8 }
  0x57   : > { %254 = sst [smem:[#allocation18 + $0x2]] %s755_s15  ;;  %s228_s3 = sadd.s32 %s455_s29, %s226_s9 }
  0x58   : > { %s456_s16 = sshll.u32 %s228_s3, 4  ;;  %s231_s6 = sshrl.u32 %s756_s5, 3 }
  0x59   : > { %s230_s27 = scalar_lea.hbm %s735_s1, %s456_s16  ;;  %s232_s0 = sand.u32 7, %s756_s5  }
  0x5a   : > { %s457_s23 = sshll.u32 %s231_s6, 8  ;;  %s758_s20 = sld [smem:[#allocation32_spill]] }
  0x5b   : > { %s234_s25 = sadd.s32 %s457_s23, %s232_s0  ;;  %s257_s12 = sshrl.u32 %s757_s8, 3 }
  0x5c   : > { %s458_s30 = sshll.u32 %s234_s25, 4  ;;  %s258_s17 = sand.u32 7, %s757_s8  }
  0x5d   : > { %s236_s24 = scalar_lea.hbm %s736_s2, %s458_s30  ;;  %s551_s18 = smov [#allocation2 + $0x6]  }
  0x5e   : > { %s552_s21 = smov [#allocation17]   ;;  %s459_s26 = sshll.u32 %s257_s12, 8 }
  0x5f   : > { %256 = dma.general %s230_s27, 512, %s236_s24, %s551_s18, %s552_s21, [#allocation18], %s753_s13, 0  }
  0x60   : > { %282 = sst [smem:[#allocation20]] %s754_s22  ;;  %s260_s5 = sadd.s32 %s459_s26, %s258_s17 }
  0x61   : > { %284 = sst [smem:[#allocation20 + $0x1]] %s754_s22  ;;  %s460_s19 = sshll.u32 %s260_s5, 4 }
  0x62   : > { %286 = sst [smem:[#allocation20 + $0x2]] %s755_s15  ;;  %s262_s9 = scalar_lea.hbm %s735_s1, %s460_s19 }
  0x63   : > { %s263_s29 = sshrl.u32 %s758_s20, 3  ;;  %s264_s3 = sand.u32 7, %s758_s20  }
  0x64   : > { %s461_s8 = sshll.u32 %s263_s29, 8  ;;  %s553_s0 = smov [#allocation2 + $0x7]  }
  0x65   : > { %s266_s16 = sadd.s32 %s461_s8, %s264_s3  ;;  %s554_s23 = smov [#allocation19]  }
  0x66   : > { %s462_s6 = sshll.u32 %s266_s16, 4 }
  0x67   : > { %s268_s27 = scalar_lea.hbm %s736_s2, %s462_s6 }
  0x68   : > { %288 = dma.general %s262_s9, 512, %s268_s27, %s553_s0, %s554_s23, [#allocation20], %s753_s13, 0  }
  0x69   : > { %515 = dma.done.wait [#allocation2], 512 }
  0x6a   : > { %516 = vsyncadd [#allocation2], 4294966784 }
  0x6b   : > { %517 = dma.done.wait [#allocation2 + $0x1], 512 }
  0x6c   : > { %518 = vsyncadd [#allocation2 + $0x1], 4294966784 }
  0x6d   : > { %519 = dma.done.wait [#allocation2 + $0x2], 512 }
  0x6e   : > { %520 = vsyncadd [#allocation2 + $0x2], 4294966784 }
  0x6f   : > { %521 = dma.done.wait [#allocation2 + $0x3], 512 }
  0x70   : > { %522 = vsyncadd [#allocation2 + $0x3], 4294966784 }
  0x71   : > { %523 = dma.done.wait [#allocation2 + $0x4], 512 }
  0x72   : > { %524 = vsyncadd [#allocation2 + $0x4], 4294966784 }
  0x73   : > { %525 = dma.done.wait [#allocation2 + $0x5], 512 }
  0x74   : > { %526 = vsyncadd [#allocation2 + $0x5], 4294966784 }
  0x75   : > { %527 = dma.done.wait [#allocation2 + $0x6], 512 }
  0x76   : > { %528 = vsyncadd [#allocation2 + $0x6], 4294966784 }
  0x77   : > { %529 = dma.done.wait [#allocation2 + $0x7], 512 }
  0x78   : > { %530 = vsyncadd [#allocation2 + $0x7], 4294966784  ;;  %s759_s22 = sld [smem:[#allocation30_spill]] }
  0x7e   : > { %s16_s19 = sadd.s32 1, %s759_s22  }
  0x7f   : > { %p13_p3 = scmp.ge.s32.totalorder %s16_s19, 2  }
  0x81   :  { %15 = sbr.rel (!%p13_p3) target bundleno = 13 (0xd), region = 65 }
  0x88   :  { %306 = vsyncmov [#allocation2] }
  0x8b   :  { %s307_s13 = vpop.sfrf %306 }
  0x8c   :  { %p463_p4 = scmp.ne.s32.totalorder %s307_s13, 0 }
  0x8e   :  { %311 = shalt.err (%p463_p4)  }
  0x8f   :  { %313 = vsyncmov [#allocation2 + $0x1] }
  0x92   :  { %s314_s15 = vpop.sfrf %313 }
  0x93   :  { %p464_p5 = scmp.ne.s32.totalorder %s314_s15, 0 }
  0x95   :  { %318 = shalt.err (%p464_p5)  }
  0x96   :  { %320 = vsyncmov [#allocation2 + $0x2] }
  0x99   :  { %s321_s20 = vpop.sfrf %320 }
  0x9a   :  { %p465_p6 = scmp.ne.s32.totalorder %s321_s20, 0 }
  0x9c   :  { %325 = shalt.err (%p465_p6)  }
  0x9d   :  { %327 = vsyncmov [#allocation2 + $0x3] }
  0xa0   :  { %s328_s25 = vpop.sfrf %327 }
  0xa1   :  { %p466_p7 = scmp.ne.s32.totalorder %s328_s25, 0 }
  0xa3   :  { %332 = shalt.err (%p466_p7)  }
  0xa4   :  { %334 = vsyncmov [#allocation2 + $0x4] }
  0xa7   :  { %s335_s30 = vpop.sfrf %334 }
  0xa8   :  { %p467_p8 = scmp.ne.s32.totalorder %s335_s30, 0 }
  0xaa   :  { %339 = shalt.err (%p467_p8)  }
  0xab   :  { %341 = vsyncmov [#allocation2 + $0x5] }
  0xae   :  { %s342_s1 = vpop.sfrf %341 }
  0xaf   :  { %p468_p9 = scmp.ne.s32.totalorder %s342_s1, 0 }
  0xb1   :  { %346 = shalt.err (%p468_p9)  }
  0xb2   :  { %348 = vsyncmov [#allocation2 + $0x6] }
  0xb5   :  { %s349_s2 = vpop.sfrf %348 }
  0xb6   :  { %p469_p10 = scmp.ne.s32.totalorder %s349_s2, 0 }
  0xb8   :  { %353 = shalt.err (%p469_p10)  }
  0xb9   :  { %355 = vsyncmov [#allocation2 + $0x7] }
  0xbc   :  { %s356_s12 = vpop.sfrf %355 }
  0xbd   :  { %p470_p11 = scmp.ne.s32.totalorder %s356_s12, 0 }
  0xbf   :  { %360 = shalt.err (%p470_p11)  }

</bundles_post_ra>
